<compile_context>
chip_gen: v7x
topology: tpu7x:2x2x1
jax: 0.10.0
libtpu: 0.0.40
codegen_flags: <defaults>
</compile_context>

<pallas_src>
import jax
import jax.numpy as jnp
from jax.experimental import pallas as pl
from jax.experimental.pallas import tpu as pltpu


def _round_up(x, m):
    return ((x + m - 1) // m) * m


# ---------------------------------------------------------------------------
# Kernel
# ---------------------------------------------------------------------------
def residual_block_kernel(x_ref,
                          w1_ref, c1_ref,
                          w2_ref, c2_ref,
                          wcat_ref, cout_ref,
                          o_ref):
    x = x_ref[...]                                                # (tm, INN) bf16

    # Linear(inn, hidden) + folded BN -> ReLU   (bias already BN-folded)
    h = jnp.dot(x, w1_ref[...], preferred_element_type=jnp.float32)
    h = jnp.maximum(h + c1_ref[...], 0.0)

    # Linear(hidden, hidden) + folded BN -> ReLU
    h = jnp.dot(h.astype(w2_ref.dtype), w2_ref[...],
                preferred_element_type=jnp.float32)
    h = jnp.maximum(h + c2_ref[...], 0.0)

    # Fused [Linear(hidden, out)+BN  ||  residual Linear(inn, out)]:
    #   [h, x] @ [W3'; Wr]  + (c3' + br)
    cat = jnp.concatenate([h.astype(wcat_ref.dtype), x], axis=-1)  # (tm, HID+INN)
    out = jnp.dot(cat, wcat_ref[...], preferred_element_type=jnp.float32)
    o_ref[...] = jnp.maximum(out + cout_ref[...], 0.0)


# ---------------------------------------------------------------------------
# Wrapper
# ---------------------------------------------------------------------------
def residual_block(x, kparams, *, tm=128):
    """x: (B, INN) float.  kparams: folded kernel params (see fold_params)."""
    B, INN = x.shape
    HID = kparams["w1"].shape[1]
    OUT = kparams["wcat"].shape[1]
    K3 = HID + INN

    # Pick a batch tile: multiple of 8, no larger than needed; pad B up to it.
    tm = max(8, min(_round_up(tm, 8), _round_up(B, 8)))
    Bp = _round_up(B, tm)
    xb = x.astype(jnp.bfloat16)
    if Bp != B:
        xb = jnp.pad(xb, ((0, Bp - B), (0, 0)))

    def const(shape):  # whole-array, grid-invariant operand
        return pl.BlockSpec(shape, lambda i: (0, 0))

    in_specs = [
        pl.BlockSpec((tm, INN), lambda i: (i, 0)),   # x, tiled over batch
        const((INN, HID)), const((1, HID)),
        const((HID, HID)), const((1, HID)),
        const((K3, OUT)), const((1, OUT)),
    ]

    out = pl.pallas_call(
        residual_block_kernel,
        out_shape=jax.ShapeDtypeStruct((Bp, OUT), jnp.float32),
        grid_spec=pltpu.PrefetchScalarGridSpec(
            num_scalar_prefetch=0,
            grid=(Bp // tm,),
            in_specs=in_specs,
            out_specs=pl.BlockSpec((tm, OUT), lambda i: (i, 0)),
        ),
        compiler_params=pltpu.CompilerParams(
            dimension_semantics=("parallel",)),
    )(xb,
      kparams["w1"], kparams["c1"],
      kparams["w2"], kparams["c2"],
      kparams["wcat"], kparams["cout"])

    return out[:B]


# ---------------------------------------------------------------------------
# Parameter construction (PyTorch-style init) and host-side folding
# ---------------------------------------------------------------------------
def _fold_bn(gamma, beta, running_mean, running_var, eps=1e-5):
    """BatchNorm1d (eval mode) -> per-feature affine y = x*scale + shift."""
    scale = gamma / jnp.sqrt(running_var + eps)
    shift = beta - running_mean * scale
    return scale[None, :], shift[None, :]


def make_params(key, inn, hidden, out):
    ks = jax.random.split(key, 16)

    def lin(kw, kb, fan_in, fan_out):
        bound = 1.0 / jnp.sqrt(fan_in)
        w = jax.random.uniform(kw, (fan_in, fan_out), jnp.float32, -bound, bound)
        b = jax.random.uniform(kb, (1, fan_out), jnp.float32, -bound, bound)
        return w, b

    w1, b1 = lin(ks[0], ks[1], inn, hidden)
    w2, b2 = lin(ks[2], ks[3], hidden, hidden)
    w3, b3 = lin(ks[4], ks[5], hidden, out)
    wr, br = lin(ks[6], ks[7], inn, out)

    def bn(kg, kb, km, kv, n):
        gamma = 1.0 + 0.1 * jax.random.normal(kg, (n,), jnp.float32)
        beta = 0.1 * jax.random.normal(kb, (n,), jnp.float32)
        mean = 0.1 * jax.random.normal(km, (n,), jnp.float32)
        var = jnp.abs(jax.random.normal(kv, (n,), jnp.float32)) + 0.5
        return _fold_bn(gamma, beta, mean, var)

    s1, t1 = bn(ks[8], ks[9], ks[10], ks[11], hidden)
    s2, t2 = bn(ks[12], ks[13], ks[14], ks[15], hidden)
    k2 = jax.random.split(jax.random.fold_in(key, 7), 4)
    s3, t3 = bn(k2[0], k2[1], k2[2], k2[3], out)

    return dict(w1=w1, b1=b1, s1=s1, t1=t1,
                w2=w2, b2=b2, s2=s2, t2=t2,
                w3=w3, b3=b3, s3=s3, t3=t3,
                wr=wr, br=br)


def fold_params(p):
    """Fold BN affines into the weights; merge layer-3 + residual weights."""
    w1f = (p["w1"] * p["s1"]).astype(jnp.bfloat16)     # column-wise scale
    c1 = p["b1"] * p["s1"] + p["t1"]                   # f32 fused bias/shift
    w2f = (p["w2"] * p["s2"]).astype(jnp.bfloat16)
    c2 = p["b2"] * p["s2"] + p["t2"]
    w3f = p["w3"] * p["s3"]
    c3 = p["b3"] * p["s3"] + p["t3"]
    wcat = jnp.concatenate([w3f, p["wr"]], axis=0).astype(jnp.bfloat16)
    cout = c3 + p["br"]                                # single final constant
    return dict(w1=w1f, c1=c1, w2=w2f, c2=c2, wcat=wcat, cout=cout)


# ---------------------------------------------------------------------------
# References
# ---------------------------------------------------------------------------
def reference_exact(x, p):
    """Unfolded f32 reference with the intended module semantics."""
    h = jnp.maximum((x @ p["w1"] + p["b1"]) * p["s1"] + p["t1"], 0.0)
    h = jnp.maximum((h @ p["w2"] + p["b2"]) * p["s2"] + p["t2"], 0.0)
    h = (h @ p["w3"] + p["b3"]) * p["s3"] + p["t3"]
    res = x @ p["wr"] + p["br"]
    return jnp.maximum(h + res, 0.0)


def reference_folded(x, kp):
    """Same precision path as the kernel (bf16 MXU operands, f32 accum)."""
    xb = x.astype(jnp.bfloat16)
    h = jnp.dot(xb, kp["w1"], preferred_element_type=jnp.float32)
    h = jnp.maximum(h + kp["c1"], 0.0)
    h = jnp.dot(h.astype(jnp.bfloat16), kp["w2"], preferred_element_type=jnp.float32)
    h = jnp.maximum(h + kp["c2"], 0.0)
    cat = jnp.concatenate([h.astype(jnp.bfloat16), xb], axis=-1)
    out = jnp.dot(cat, kp["wcat"], preferred_element_type=jnp.float32)
    return jnp.maximum(out + kp["cout"], 0.0)


# ---------------------------------------------------------------------------
if __name__ == "__main__":
    # Lane-dense feature sizes (multiples of 128) and enough batch for two
    # 128-row tiles (two grid steps -> both v7x TensorCores get work).
    B, INN, HID, OUT = 256, 128, 256, 128
    key = jax.random.PRNGKey(0)
    kx, kp = jax.random.split(key)
    x = jax.random.normal(kx, (B, INN), jnp.float32)
    params = make_params(kp, INN, HID, OUT)
    kparams = fold_params(params)

    out = residual_block(x, kparams, tm=128)
    out = jax.block_until_ready(out)
    assert out.shape == (B, OUT)

    # Tight check vs. a JAX reference that follows the same bf16/f32 path.
    ref_same = reference_folded(x, kparams)
    assert jnp.allclose(out, ref_same, atol=1e-3, rtol=1e-3), \
        "mismatch vs same-precision reference"

    # Looser check vs. the exact f32 (unfolded) semantics of the module.
    ref_f32 = reference_exact(x, params)
    assert jnp.allclose(out, ref_f32, atol=7e-2, rtol=7e-2), \
        "mismatch vs exact f32 reference"

    print("KERNEL_OK")
</pallas_src>

<mosaic_0001>
module attributes {stable_mosaic.version = 11 : i64} {
  func.func @residual_block_kernel(%arg0: i32, %arg1: memref<128x128xbf16, #tpu.memory_space<vmem>>, %arg2: memref<128x256xbf16, #tpu.memory_space<vmem>>, %arg3: memref<1x256xf32, #tpu.memory_space<vmem>>, %arg4: memref<256x256xbf16, #tpu.memory_space<vmem>>, %arg5: memref<1x256xf32, #tpu.memory_space<vmem>>, %arg6: memref<384x128xbf16, #tpu.memory_space<vmem>>, %arg7: memref<1x128xf32, #tpu.memory_space<vmem>>, %arg8: memref<128x128xf32, #tpu.memory_space<vmem>>) attributes {dimension_semantics = [#tpu.dimension_semantics<parallel>], iteration_bounds = array<i64: 2>, scalar_prefetch = 0 : i64, scratch_operands = 0 : i64, tpu.core_type = #tpu.core_type<tc>, window_params = [{transform_indices = @transform_0, window_bounds = array<i64: 128, 128>}, {pipeline_mode = #tpu.pipeline_mode<synchronous>, transform_indices = @transform_1, window_bounds = array<i64: 128, 256>}, {pipeline_mode = #tpu.pipeline_mode<synchronous>, transform_indices = @transform_2, window_bounds = array<i64: 1, 256>}, {pipeline_mode = #tpu.pipeline_mode<synchronous>, transform_indices = @transform_3, window_bounds = array<i64: 256, 256>}, {pipeline_mode = #tpu.pipeline_mode<synchronous>, transform_indices = @transform_4, window_bounds = array<i64: 1, 256>}, {pipeline_mode = #tpu.pipeline_mode<synchronous>, transform_indices = @transform_5, window_bounds = array<i64: 384, 128>}, {pipeline_mode = #tpu.pipeline_mode<synchronous>, transform_indices = @transform_6, window_bounds = array<i64: 1, 128>}, {transform_indices = @transform_7, window_bounds = array<i64: 128, 128>}]} {
    %c0 = arith.constant 0 : index
    %c0_0 = arith.constant 0 : index
    %0 = vector.load %arg1[%c0, %c0_0] : memref<128x128xbf16, #tpu.memory_space<vmem>>, vector<128x128xbf16>
    %c0_1 = arith.constant 0 : index
    %c0_2 = arith.constant 0 : index
    %1 = vector.load %arg2[%c0_1, %c0_2] : memref<128x256xbf16, #tpu.memory_space<vmem>>, vector<128x256xbf16>
    %cst = arith.constant dense<0.000000e+00> : vector<128x256xf32>
    %2 = tpu.matmul %0, %1, %cst {dimension_numbers = #tpu.dot_dimension_numbers<[1], [0], [0], [1], [0, 0, 1, 1], [], []>} : vector<128x128xbf16>, vector<128x256xbf16>, vector<128x256xf32> -> vector<128x256xf32>
    %c0_3 = arith.constant 0 : index
    %c0_4 = arith.constant 0 : index
    %3 = vector.load %arg3[%c0_3, %c0_4] : memref<1x256xf32, #tpu.memory_space<vmem>>, vector<1x256xf32>
    %4 = vector.broadcast %3 : vector<1x256xf32> to vector<128x256xf32>
    %5 = arith.addf %2, %4 : vector<128x256xf32>
    %cst_5 = arith.constant 0.000000e+00 : f32
    %6 = vector.broadcast %cst_5 : f32 to vector<128x256xf32>
    %7 = arith.maximumf %5, %6 : vector<128x256xf32>
    %8 = arith.truncf %7 : vector<128x256xf32> to vector<128x256xbf16>
    %c0_6 = arith.constant 0 : index
    %c0_7 = arith.constant 0 : index
    %9 = vector.load %arg4[%c0_6, %c0_7] : memref<256x256xbf16, #tpu.memory_space<vmem>>, vector<256x256xbf16>
    %cst_8 = arith.constant dense<0.000000e+00> : vector<128x256xf32>
    %10 = tpu.matmul %8, %9, %cst_8 {dimension_numbers = #tpu.dot_dimension_numbers<[1], [0], [0], [1], [0, 0, 1, 1], [], []>} : vector<128x256xbf16>, vector<256x256xbf16>, vector<128x256xf32> -> vector<128x256xf32>
    %c0_9 = arith.constant 0 : index
    %c0_10 = arith.constant 0 : index
    %11 = vector.load %arg5[%c0_9, %c0_10] : memref<1x256xf32, #tpu.memory_space<vmem>>, vector<1x256xf32>
    %12 = vector.broadcast %11 : vector<1x256xf32> to vector<128x256xf32>
    %13 = arith.addf %10, %12 : vector<128x256xf32>
    %cst_11 = arith.constant 0.000000e+00 : f32
    %14 = vector.broadcast %cst_11 : f32 to vector<128x256xf32>
    %15 = arith.maximumf %13, %14 : vector<128x256xf32>
    %16 = arith.truncf %15 : vector<128x256xf32> to vector<128x256xbf16>
    %17 = tpu.concatenate %16, %0 in 1 : vector<128x256xbf16>, vector<128x128xbf16> -> vector<128x384xbf16>
    %c0_12 = arith.constant 0 : index
    %c0_13 = arith.constant 0 : index
    %18 = vector.load %arg6[%c0_12, %c0_13] : memref<384x128xbf16, #tpu.memory_space<vmem>>, vector<384x128xbf16>
    %cst_14 = arith.constant dense<0.000000e+00> : vector<128x128xf32>
    %19 = tpu.matmul %17, %18, %cst_14 {dimension_numbers = #tpu.dot_dimension_numbers<[1], [0], [0], [1], [0, 0, 1, 1], [], []>} : vector<128x384xbf16>, vector<384x128xbf16>, vector<128x128xf32> -> vector<128x128xf32>
    %c0_15 = arith.constant 0 : index
    %c0_16 = arith.constant 0 : index
    %20 = vector.load %arg7[%c0_15, %c0_16] : memref<1x128xf32, #tpu.memory_space<vmem>>, vector<1x128xf32>
    %21 = vector.broadcast %20 : vector<1x128xf32> to vector<128x128xf32>
    %22 = arith.addf %19, %21 : vector<128x128xf32>
    %cst_17 = arith.constant 0.000000e+00 : f32
    %23 = vector.broadcast %cst_17 : f32 to vector<128x128xf32>
    %24 = arith.maximumf %22, %23 : vector<128x128xf32>
    %c0_18 = arith.constant 0 : index
    %c0_19 = arith.constant 0 : index
    %25 = vector.load %arg8[%c0_18, %c0_19] : memref<128x128xf32, #tpu.memory_space<vmem>>, vector<128x128xf32>
    tpu.vector_store %arg8[%c0_18, %c0_19], %24 {strides = array<i32>} : memref<128x128xf32, #tpu.memory_space<vmem>>, vector<128x128xf32>,
    return
  }
  func.func @transform_0(%arg0: i32) -> (i32, i32) {
    %c0_i32 = arith.constant 0 : i32
    %c0_i32_0 = arith.constant 0 : i32
    return %arg0, %c0_i32 : i32, i32
  }
  func.func @transform_1(%arg0: i32) -> (i32, i32) {
    %c0_i32 = arith.constant 0 : i32
    %c0_i32_0 = arith.constant 0 : i32
    %c0_i32_1 = arith.constant 0 : i32
    return %c0_i32, %c0_i32_0 : i32, i32
  }
  func.func @transform_2(%arg0: i32) -> (i32, i32) {
    %c0_i32 = arith.constant 0 : i32
    %c0_i32_0 = arith.constant 0 : i32
    %c0_i32_1 = arith.constant 0 : i32
    return %c0_i32, %c0_i32_0 : i32, i32
  }
  func.func @transform_3(%arg0: i32) -> (i32, i32) {
    %c0_i32 = arith.constant 0 : i32
    %c0_i32_0 = arith.constant 0 : i32
    %c0_i32_1 = arith.constant 0 : i32
    return %c0_i32, %c0_i32_0 : i32, i32
  }
  func.func @transform_4(%arg0: i32) -> (i32, i32) {
    %c0_i32 = arith.constant 0 : i32
    %c0_i32_0 = arith.constant 0 : i32
    %c0_i32_1 = arith.constant 0 : i32
    return %c0_i32, %c0_i32_0 : i32, i32
  }
  func.func @transform_5(%arg0: i32) -> (i32, i32) {
    %c0_i32 = arith.constant 0 : i32
    %c0_i32_0 = arith.constant 0 : i32
    %c0_i32_1 = arith.constant 0 : i32
    return %c0_i32, %c0_i32_0 : i32, i32
  }
  func.func @transform_6(%arg0: i32) -> (i32, i32) {
    %c0_i32 = arith.constant 0 : i32
    %c0_i32_0 = arith.constant 0 : i32
    %c0_i32_1 = arith.constant 0 : i32
    return %c0_i32, %c0_i32_0 : i32, i32
  }
  func.func @transform_7(%arg0: i32) -> (i32, i32) {
    %c0_i32 = arith.constant 0 : i32
    %c0_i32_0 = arith.constant 0 : i32
    return %arg0, %c0_i32 : i32, i32
  }
}

</mosaic_0001>

<bundles_post_ra>
// kernel: tpu_custom_call.1
= control target key start
LH: loop header
LB: loop body
LE: loop exit
PB: predicated region body
PF: predicated region fallthrough
CT: control target
= control target key end

     0   :  { %12 = vsyncpa [#allocation3], 0  ;;  %s2704_s0 = inlined_call_operand.hbm [shape: bf16[256,128], index: 0, kind: input, shape index: {}]   ;;  %s2705_s1 = inlined_call_operand.hbm [shape: bf16[128,256], index: 1, kind: input, shape index: {}]   ;;  %s2706_s2 = inlined_call_operand.vmem [shape: f32[1,256], index: 2, kind: input, shape index: {}]   ;;  %s2707_s3 = inlined_call_operand.hbm [shape: bf16[256,256], index: 3, kind: input, shape index: {}]   ;;  %s2708_s4 = inlined_call_operand.vmem [shape: f32[1,256], index: 4, kind: input, shape index: {}]   ;;  %s2709_s5 = inlined_call_operand.hbm [shape: bf16[384,128], index: 5, kind: input, shape index: {}]   ;;  %s2710_s6 = inlined_call_operand.vmem [shape: f32[1,128], index: 6, kind: input, shape index: {}]   ;;  %s2711_s7 = inlined_call_operand.hbm [shape: f32[256,128], index: 7, kind: output, shape index: {}]  }
   0x1   :  { %14 = vsyncpa [#allocation3 + $0x1], 0 }
   0x2   :  { %15 = vsyncpa [#allocation6], 0 }
   0x3   :  { %16 = vsyncpa [#allocation9], 0 }
   0x4   :  { %17 = vsyncpa [#allocation4], 0 }
   0x5   :  { %19 = vsyncpa [#allocation4 + $0x1], 0  ;;  %s2228_s24 = smov 0   ;;  %s2230_s25 = smov 0  }
   0x6   :  { %s2232_s26 = smov 0   ;;  %s2234_s27 = smov 0  }
   0x7 LB: > { %s2249_s28 = sadd.s32 4294967295, %s2174_s27   ;;  %s1583_s29 = sadd.s32 4294967294, %s2174_s27   ;;  %s2174_s27 = sphi %s2234_s27, %s2737_s27   ;;  %s2170_s26 = sphi %s2232_s26, %s2736_s26   ;;  %s2166_s25 = sphi %s2230_s25, %s2735_s25   ;;  %s2162_s24 = sphi %s2228_s24, %s2734_s24  }
   0x8   : > { %p45_p0 = scmp.ne.s32.totalorder %s2166_s25, %s2162_s24  ;;  %p2712_p1 = scmp.eq.s32.totalorder %s2249_s28, 0 }
   0x9   : > { %p201_p3 = scmp.eq.s32.totalorder %s1583_s29, 1  ;;  %p1584_p5 = scmp.ge.s32.totalorder %s2174_s27, 1 }
   0xa   : > { %p2258_p4 = por %p2712_p1, %p45_p0  ;;  %p208_p7 = scmp.lt.s32.totalorder %s2174_s27, 3 }
   0xb   : > { %p2263_p6 = por %p201_p3, %p45_p0  ;;  %s2176_s10 = smov [#allocation5]  }
   0xc   : > { %s2716_s30 = scalar_select %p2258_p4, 1, 0 }
   0xd   : > { %s2717_s8 = scalar_select %p2263_p6, 1, 0 }
   0xe   : > { %p2268_p8 = pnand %p1584_p5, %p208_p7  ;;  %s220_s11 = sshll.u32 %s2176_s10, 4  ;;  %s2272_s11 = int_to_ptr.vmem [resolvable:$true] %s220_s11 }
   0xf   : > { %2718 = sst [smem:[#allocation15_spill]] %s2717_s8  ;;  %s2177_s13 = smov [#allocation7]  }
  0x10   : > { %s2719_s9 = scalar_select %p2268_p8, 1, 0 }
  0x11   : > { %p1814_p9 = pneg %p2268_p8  ;;  %s236_s14 = sshll.u32 %s2177_s13, 4  ;;  %s2283_s14 = int_to_ptr.vmem [resolvable:$true] %s236_s14 }
  0x12   : > { %s2178_s15 = smov [#allocation8]   ;;  %s1986_s19 = scalar_lea.hbm %s2705_s1, 2048 }
  0x13   : > { %p2279_p11 = pnand %p1814_p9, %p2712_p1  ;;  %s2285_s16 = sshll.u32 %s2178_s15, 4  ;;  %s253_s16 = int_to_ptr.vmem [resolvable:$true] %s2285_s16 }
  0x14   : > { %p1987_p12 = scmp.ne.s32.totalorder %s2705_s1, %s1986_s19  ;;  %p1993_p5 = scmp.lt.u32.totalorder %s1986_s19, %s2705_s1 }
  0x15   : > { %p2295_p13 = pneg %p2279_p11 }
  0x17   : > { %p1989_p0 = pnand %p2295_p13, %p1987_p12 }
  0x19   : > { %p1990_p3 = pneg %p1989_p0 }
  0x1b   : > { %p1995_p7 = pnand %p1993_p5, %p1990_p3 }
  0x1d   : > { %1998 = shalt.err (!%p1995_p7)
}
  0x1e   : > { %s1999_s10 = scalar_lea.vmem %s2272_s11, 2048  ;;  %p2007_p2 = scmp.lt.s32.totalorder %s2272_s11, %s2272_s11 }
  0x1f   : > { %p2000_p9 = scmp.ne.s32.totalorder %s2272_s11, %s1999_s10  ;;  %p2008_p6 = scmp.lt.s32.totalorder %s1999_s10, %s1999_s10 }
  0x21   : > { %p2002_p10 = pnand %p2000_p9, %p2295_p13  ;;  %p2009_p12 = por %p2008_p6, %p2007_p2 }
  0x23   : > { %p2003_p1 = pneg %p2002_p10 }
  0x25   : > { %p2010_p0 = pnand %p2009_p12, %p2003_p1 }
  0x27   : > { %2013 = shalt.err (!%p2010_p0)
}
  0x28   : > { %s2179_s13 = smov 128   ;;  %s2180_s15 = smov 8  }
  0x29   : > { %1817 = dma.hbm_to_vmem [thread:$0]  (!%p2279_p11), %s2705_s1, 2048, %s2272_s11, [#allocation6], %s2179_s13, %s2179_s13, %s2180_s15  }
  0x2a   : > { %s2014_s21 = scalar_lea.hbm %s2707_s3, 4096 }
  0x2b   : > { %p2015_p2 = scmp.ne.s32.totalorder %s2707_s3, %s2014_s21  ;;  %p2021_p10 = scmp.lt.u32.totalorder %s2014_s21, %s2707_s3 }
  0x2d   : > { %p2017_p1 = pnand %p2015_p2, %p2295_p13 }
  0x2f   : > { %p2018_p6 = pneg %p2017_p1 }
  0x31   : > { %p2023_p3 = pnand %p2021_p10, %p2018_p6 }
  0x33   : > { %2026 = shalt.err (!%p2023_p3)
}
  0x34   : > { %s2027_s11 = scalar_lea.vmem %s2283_s14, 4096  ;;  %p2035_p12 = scmp.lt.s32.totalorder %s2283_s14, %s2283_s14 }
  0x35   : > { %p2028_p5 = scmp.ne.s32.totalorder %s2283_s14, %s2027_s11  ;;  %p2036_p0 = scmp.lt.s32.totalorder %s2027_s11, %s2027_s11 }
  0x37   : > { %p2030_p7 = pnand %p2028_p5, %p2295_p13  ;;  %p2037_p2 = por %p2036_p0, %p2035_p12 }
  0x39   : > { %p2031_p9 = pneg %p2030_p7 }
  0x3b   : > { %p2038_p1 = pnand %p2037_p2, %p2031_p9 }
  0x3d   : > { %2041 = shalt.err (!%p2038_p1)
}
  0x3e   : > { %1820 = dma.hbm_to_vmem [thread:$0]  (!%p2279_p11), %s2707_s3, 4096, %s2283_s14, [#allocation6], %s2179_s13, %s2179_s13, %s2180_s15  }
  0x3f   : > { %s2042_s20 = scalar_lea.hbm %s2709_s5, 3072 }
  0x40   : > { %p2043_p6 = scmp.ne.s32.totalorder %s2709_s5, %s2042_s20  ;;  %p2049_p5 = scmp.lt.u32.totalorder %s2042_s20, %s2709_s5 }
  0x42   : > { %p2045_p10 = pnand %p2043_p6, %p2295_p13 }
  0x44   : > { %p2046_p3 = pneg %p2045_p10 }
  0x46   : > { %p2051_p7 = pnand %p2049_p5, %p2046_p3 }
  0x48   : > { %2054 = shalt.err (!%p2051_p7)
}
  0x49   : > { %s2055_s11 = scalar_lea.vmem %s253_s16, 3072  ;;  %p2063_p2 = scmp.lt.s32.totalorder %s253_s16, %s253_s16 }
  0x4a   : > { %p2056_p9 = scmp.ne.s32.totalorder %s253_s16, %s2055_s11  ;;  %p2064_p1 = scmp.lt.s32.totalorder %s2055_s11, %s2055_s11 }
  0x4c   : > { %p2058_p12 = pnand %p2056_p9, %p2295_p13  ;;  %p2065_p4 = por %p2064_p1, %p2063_p2 }
  0x4e   : > { %p2059_p0 = pneg %p2058_p12 }
  0x50   : > { %p2066_p8 = pnand %p2065_p4, %p2059_p0 }
  0x52   : > { %2069 = shalt.err (!%p2066_p8)
}
  0x53   : > { %s2181_s14 = smov 64   ;;  %s2182_s22 = smov 4  }
  0x54   : > { %1823 = dma.hbm_to_vmem [thread:$0]  (!%p2279_p11), %s2709_s5, 3072, %s253_s16, [#allocation9], %s2181_s14, %s2181_s14, %s2182_s22  }
  0x55   : > { %s2362_s8 = sadd.s32 1, %s2174_s27   ;;  %s32_s18 = sadd.s32 1, %s2170_s26 }
  0x56   : > { %s29_s17 = ssub.s32 %s2174_s27, %s2362_s8  ;;  %p39_p8 = scmp.ne.s32.totalorder %s2170_s26, %s2166_s25 }
  0x57   : > { %p30_p4 = scmp.eq.s32.totalorder %s29_s17, 0  ;;  %p40_p13 = scmp.eq.s32.totalorder %s2174_s27, 0 }
  0x58   : > { %p1835_p6 = scmp.lt.s32.totalorder %s2174_s27, 2  ;;  %p2722_p3 = scmp.eq.s32.totalorder %s2249_s28, 1 }
  0x59   : > { %s2372_s19 = scalar_select %p30_p4, %s2170_s26, %s32_s18  }
  0x5a   : > { %p41_p10 = por %p40_p13, %p39_p8  ;;  %p2376_p5 = por %p2722_p3, %p39_p8 }
  0x5b   : > { %s269_s20 = sand.u32 1, %s2170_s26   ;;  %s1684_s21 = sshll.u32 %s2174_s27, 10 }
  0x5c   : > { %s1589_s16 = sshll.u32 %s269_s20, 6  ;;  %s2385_s10 = scalar_lea.hbm %s2704_s0, %s1684_s21 }
  0x5d   : > { %s273_s11 = scalar_lea.vmem [#allocation2], %s1589_s16  ;;  %p2387_p11 = pnand %p1835_p6, %p41_p10 }
  0x5e   : > { %s280_s13 = sshll.u32 %s273_s11, 4  ;;  %s2393_s17 = scalar_lea.sflag [#allocation3], %s269_s20  ;;  %s2391_s13 = int_to_ptr.vmem [resolvable:$true] %s280_s13 }
  0x5f   : > { %s2070_s18 = scalar_lea.hbm %s2385_s10, 1024  ;;  %p2072_p9 = pneg %p2387_p11 }
  0x60   : > { %p2071_p7 = scmp.ne.s32.totalorder %s2385_s10, %s2070_s18  ;;  %s2075_s23 = scalar_lea.hbm %s2704_s0, 2048 }
  0x61   : > { %p2076_p2 = scmp.lt.u32.totalorder %s2385_s10, %s2704_s0  ;;  %p2077_p1 = scmp.lt.u32.totalorder %s2075_s23, %s2070_s18 }
  0x62   : > { %p2073_p12 = pnand %p2072_p9, %p2071_p7  ;;  %p2079_p8 = scmp.lt.u32.totalorder %s2070_s18, %s2385_s10 }
  0x63   : > { %p2078_p4 = por %p2077_p1, %p2076_p2 }
  0x64   : > { %p2074_p0 = pneg %p2073_p12 }
  0x65   : > { %p2080_p13 = por %p2079_p8, %p2078_p4 }
  0x67   : > { %p2081_p6 = pnand %p2080_p13, %p2074_p0 }
  0x69   : > { %2084 = shalt.err (!%p2081_p6)
}
  0x6a   : > { %s2085_s20 = scalar_lea.vmem %s2391_s13, 1024  ;;  %s2183_s21 = smov [#allocation2]  }
  0x6b   : > { %p2086_p10 = scmp.ne.s32.totalorder %s2391_s13, %s2085_s20  ;;  %s2090_s16 = sshll.u32 %s2183_s21, 4  ;;  %s2091_s16 = int_to_ptr.vmem [resolvable:$false] %s2090_s16 }
  0x6c   : > { %s2092_s29 = scalar_lea.vmem %s2091_s16, 2048  ;;  %p2093_p12 = scmp.lt.s32.totalorder %s2391_s13, %s2091_s16 }
  0x6d   : > { %p2088_p3 = pnand %p2086_p10, %p2072_p9  ;;  %p2094_p2 = scmp.lt.s32.totalorder %s2092_s29, %s2085_s20 }
  0x6f   : > { %p2089_p7 = pneg %p2088_p3  ;;  %p2095_p1 = por %p2094_p2, %p2093_p12 }
  0x71   : > { %p2096_p4 = pnand %p2095_p1, %p2089_p7 }
  0x73   : > { %2099 = shalt.err (!%p2096_p4)
}
  0x74   : > { %1827 = dma.hbm_to_vmem [thread:$0]  (!%p2387_p11), %s2385_s10, 1024, %s2391_s13, %s2393_s17, %s2181_s14, %s2181_s14, %s2182_s22  }
  0x75   : > { %p2725_p9 = scmp.ne.s32.totalorder %s2719_s9, 0 }
  0x76   : > { %s2427_s18 = sand.u32 (!%p2725_p9), 1, %s2166_s25   ;;  %p2726_p0 = scmp.ne.s32.totalorder (!%p2725_p9), %s2716_s30, 0 }
  0x77   : > { %292 = sbr.rel (%p2725_p9) target bundleno = 905 (0x389), region = 48  ;;  %s1593_s23 = sshll.u32 (!%p2725_p9), %s2427_s18, 6 }
  0x78   : > { %s295_s11 = scalar_lea.sflag (!%p2725_p9), [#allocation3], %s2427_s18  ;;  %s2431_s20 = scalar_lea.vmem (!%p2725_p9), [#allocation2], %s1593_s23 }
  0x7e   : > { %2145 = dma.done.wait (%p2726_p0), %s295_s11, 1024  }
  0x7f   : > { %2147 = vsyncadd (%p2726_p0), %s295_s11, 4294966272  ;;  %p2727_p11 = scmp.eq.s32.totalorder %s2249_s28, 0 }
  0x81   : > { %2149 = dma.done.wait (%p2727_p11), [#allocation6], 6144   ;;  %p2728_p8 = pmov %p2727_p11 }
  0x83   : > { %2151 = vsyncadd (%p2728_p8), [#allocation6], 4294961152  ;;  %p2729_p13 = pmov %p2728_p8 }
  0x84   : > { %p2730_p6 = pmov %p2728_p8 }
  0x85   : > { %2153 = dma.done.wait (%p2729_p13), [#allocation9], 3072  }
  0x86   : > { %2155 = vsyncadd (%p2730_p6), [#allocation9], 4294964224  ;;  %v2184_v0 = vmov 0   ;;  %v1882_v1 = vld [vmem:[#allocation5 + $0x4] ss:$8 sps:$4 sm:$0xff]   ;;  %v2457_v34 = vld [vmem:[%s2431_s20 + $0x10] sm:$0xff]  }
  0x87   : > { %548 = vmatprep.mubr.bf16.mxu0 %v2184_v0  ;;  %v1884_v2 = vld [vmem:[#allocation5] ss:$8 sps:$4 sm:$0xff]   ;;  %516 = vmatprep.subr.bf16.mxu0 %v1882_v1  ;;  %v1885_v3 = vld [vmem:[#allocation5 + $0x14] ss:$8 sps:$4 sm:$0xff]   ;;  %v1887_v4 = vld [vmem:[#allocation5 + $0x10] ss:$8 sps:$4 sm:$0xff]  }
  0x88   : > { %517 = vmatpush1.bf16.msra.mxu0 %v1884_v2  ;;  %v1888_v5 = vld [vmem:[#allocation5 + $0x24] ss:$8 sps:$4 sm:$0xff]   ;;  %v1890_v6 = vld [vmem:[#allocation5 + $0x20] ss:$8 sps:$4 sm:$0xff]   ;;  %v1891_v7 = vld [vmem:[#allocation5 + $0x34] ss:$8 sps:$4 sm:$0xff]  }
  0x89   : > { %518 = vmatprep.subr.bf16.mxu0 %v1885_v3  ;;  %v1893_v8 = vld [vmem:[#allocation5 + $0x30] ss:$8 sps:$4 sm:$0xff]   ;;  %v1894_v9 = vld [vmem:[#allocation5 + $0x44] ss:$8 sps:$4 sm:$0xff]   ;;  %v1896_v10 = vld [vmem:[#allocation5 + $0x40] ss:$8 sps:$4 sm:$0xff]  }
  0x8a   : > { %v1897_v11 = vld [vmem:[#allocation5 + $0x54] ss:$8 sps:$4 sm:$0xff]   ;;  %v1899_v12 = vld [vmem:[#allocation5 + $0x50] ss:$8 sps:$4 sm:$0xff]   ;;  %v1900_v13 = vld [vmem:[#allocation5 + $0x64] ss:$8 sps:$4 sm:$0xff]  }
  0x8b   : > { %v1914_v14 = vld [vmem:[#allocation7 + $0x4] ss:$8 sps:$4 sm:$0xff]   ;;  %v1916_v15 = vld [vmem:[#allocation7] ss:$8 sps:$4 sm:$0xff]   ;;  %v1917_v16 = vld [vmem:[#allocation7 + $0x14] ss:$8 sps:$4 sm:$0xff]  }
  0x8c   : > { %519 = vmatpush1.bf16.msra.mxu0 %v1887_v4  ;;  %881 = vmatprep.subr.bf16.mxu1 %v1914_v14  ;;  %v1919_v17 = vld [vmem:[#allocation7 + $0x10] ss:$8 sps:$4 sm:$0xff]   ;;  %v1902_v18 = vld [vmem:[#allocation5 + $0x60] ss:$8 sps:$4 sm:$0xff]   ;;  %v1920_v19 = vld [vmem:[#allocation7 + $0x24] ss:$8 sps:$4 sm:$0xff]  }
  0x8d   : > { %520 = vmatprep.subr.bf16.mxu0 %v1888_v5  ;;  %882 = vmatpush1.bf16.msra.mxu1 %v1916_v15  ;;  %v1903_v20 = vld [vmem:[#allocation5 + $0x74] ss:$8 sps:$4 sm:$0xff]   ;;  %v1922_v21 = vld [vmem:[#allocation7 + $0x20] ss:$8 sps:$4 sm:$0xff]   ;;  %v1905_v22 = vld [vmem:[#allocation5 + $0x70] ss:$8 sps:$4 sm:$0xff]  }
  0x8e   : > { %883 = vmatprep.subr.bf16.mxu1 %v1917_v16  ;;  %v1923_v23 = vld [vmem:[#allocation7 + $0x34] ss:$8 sps:$4 sm:$0xff]   ;;  %v2447_v24 = vld [vmem:[%s2431_s20] sm:$0xff]   ;;  %v1925_v25 = vld [vmem:[#allocation7 + $0x30] ss:$8 sps:$4 sm:$0xff]   ;;  %s1597_s15 = sshll.u32 %s2427_s18, 7 }
  0x8f   : > { %v1926_v26 = vld [vmem:[#allocation7 + $0x44] ss:$8 sps:$4 sm:$0xff]   ;;  %v1928_v27 = vld [vmem:[#allocation7 + $0x40] ss:$8 sps:$4 sm:$0xff]   ;;  %v1929_v28 = vld [vmem:[#allocation7 + $0x54] ss:$8 sps:$4 sm:$0xff]  }
  0x90   : > { %521 = vmatpush1.bf16.msra.mxu0 %v1890_v6  ;;  %v2452_v29 = vld [vmem:[%s2431_s20 + $0x8] sm:$0xff]   ;;  %v1931_v30 = vld [vmem:[#allocation7 + $0x50] ss:$8 sps:$4 sm:$0xff]   ;;  %v1935_v33 = vld [vmem:[#allocation7 + $0x74] ss:$8 sps:$4 sm:$0xff]   ;;  %s2611_s17 = scalar_lea.vmem [#allocation10], %s1597_s15 }
  0x91   : > { %522 = vmatprep.subr.bf16.mxu0 %v1891_v7  ;;  %884 = vmatpush1.bf16.msra.mxu1 %v1919_v17  ;;  %v1932_v31 = vld [vmem:[#allocation7 + $0x64] ss:$8 sps:$4 sm:$0xff]   ;;  %v1934_v32 = vld [vmem:[#allocation7 + $0x60] ss:$8 sps:$4 sm:$0xff]   ;;  %v1937_v35 = vld [vmem:[#allocation7 + $0x70] ss:$8 sps:$4 sm:$0xff]  }
  0x92   : > { %885 = vmatprep.subr.bf16.mxu1 %v1920_v19  ;;  %v1938_v36 = vld [vmem:[#allocation7 + $0x84] ss:$8 sps:$4 sm:$0xff]   ;;  %v1940_v37 = vld [vmem:[#allocation7 + $0x80] ss:$8 sps:$4 sm:$0xff]   ;;  %v1941_v38 = vld [vmem:[#allocation7 + $0x94] ss:$8 sps:$4 sm:$0xff]  }
  0x93   : > { %v2462_v39 = vld [vmem:[%s2431_s20 + $0x18] sm:$0xff]   ;;  %v1944_v41 = vld [vmem:[#allocation7 + $0xa4] ss:$8 sps:$4 sm:$0xff]   ;;  %v1946_v42 = vld [vmem:[#allocation7 + $0xa0] ss:$8 sps:$4 sm:$0xff]   ;;  %s1685_s21 = sshll.u32 %s2249_s28, 11 }
  0x94   : > { %523 = vmatpush1.bf16.msra.mxu0 %v1893_v8  ;;  %v1943_v40 = vld [vmem:[#allocation7 + $0x90] ss:$8 sps:$4 sm:$0xff]   ;;  %v1947_v43 = vld [vmem:[#allocation7 + $0xb4] ss:$8 sps:$4 sm:$0xff]   ;;  %v2467_v44 = vld [vmem:[%s2431_s20 + $0x20] sm:$0xff]   ;;  %v378_v8 = vlaneseq  ;;  %s1481_s16 = sshll.u32 %s2611_s17, 4  ;;  %s2656_s11 = scalar_lea.hbm %s2711_s7, %s1685_s21  ;;  %s2658_s16 = int_to_ptr.vmem [resolvable:$true] %s1481_s16 }
  0x95   : > { %524 = vmatprep.subr.bf16.mxu0 %v1894_v9  ;;  %886 = vmatpush1.bf16.msra.mxu1 %v1922_v21  ;;  %v1949_v45 = vld [vmem:[#allocation7 + $0xb0] ss:$8 sps:$4 sm:$0xff]   ;;  %v1950_v46 = vld [vmem:[#allocation7 + $0xc4] ss:$8 sps:$4 sm:$0xff]   ;;  %v1952_v47 = vld [vmem:[#allocation7 + $0xc0] ss:$8 sps:$4 sm:$0xff]  }
  0x96   : > { %887 = vmatprep.subr.bf16.mxu1 %v1923_v23  ;;  %v1953_v48 = vld [vmem:[#allocation7 + $0xd4] ss:$8 sps:$4 sm:$0xff]   ;;  %v2472_v49 = vld [vmem:[%s2431_s20 + $0x28] sm:$0xff]   ;;  %v1955_v52 = vld [vmem:[#allocation7 + $0xd0] ss:$8 sps:$4 sm:$0xff]   ;;  %v2485_v9 = vshrl.u32 %v378_v8, 7 }
  0x97   : > { %v2477_v50 = vld [vmem:[%s2431_s20 + $0x30] sm:$0xff]   ;;  %v2482_v51 = vld [vmem:[%s2431_s20 + $0x38] sm:$0xff]   ;;  %v1956_v53 = vld [vmem:[#allocation7 + $0xe4] ss:$8 sps:$4 sm:$0xff]   ;;  %s1468_s20 = scalar_lea.sflag [#allocation4], %s2427_s18  ;;  %s2100_s30 = scalar_lea.vmem %s2658_s16, 2048 }
  0x98   : > { %525 = vmatpush1.bf16.msra.mxu0 %v1896_v10  ;;  %v1958_v54 = vld [vmem:[#allocation7 + $0xe0] ss:$8 sps:$4 sm:$0xff]   ;;  %v1959_v55 = vld [vmem:[#allocation7 + $0xf4] ss:$8 sps:$4 sm:$0xff]   ;;  %v1961_v56 = vld [vmem:[#allocation7 + $0xf0] ss:$8 sps:$4 sm:$0xff]   ;;  %p2101_p10 = scmp.ne.s32.totalorder %s2658_s16, %s2100_s30 }
  0x99   : > { %526 = vmatprep.subr.bf16.mxu0 %v1897_v11  ;;  %888 = vmatpush1.bf16.msra.mxu1 %v1925_v25  ;;  %v1962_v57 = vld [vmem:[#allocation8 + $0x40] sm:$0xff]   ;;  %v1964_v59 = vld [vmem:[#allocation8 + $0x48] sm:$0xff]   ;;  %v1966_v62 = vld [vmem:[#allocation8 + $0x50] sm:$0xff]   ;;  %v380_v10 = vsub.s32 0, %v2485_v9  ;;  %s2185_s28 = smov [#allocation10]  }
  0x9a   : > { %889 = vmatprep.subr.bf16.mxu1 %v1926_v26  ;;  %v1963_v58 = vld [vmem:[#allocation8] sm:$0xff]   ;;  %v1965_v60 = vld [vmem:[#allocation8 + $0x8] sm:$0xff]   ;;  %v1967_v63 = vld [vmem:[#allocation8 + $0x10] sm:$0xff]   ;;  %p2102_p3 = pnand %p2101_p10, %p2376_p5  ;;  %s2104_s9 = sshll.u32 %s2185_s28, 4  ;;  %s2105_s9 = int_to_ptr.vmem [resolvable:$false] %s2104_s9 }
  0x9b   : > { %v1972_v61 = vld [vmem:[#allocation8 + $0x80] sm:$0xff]   ;;  %v1969_v1 = vld [vmem:[#allocation8 + $0x18] sm:$0xff]   ;;  %v1973_v4 = vld [vmem:[#allocation8 + $0x68] sm:$0xff]   ;;  %s2106_s14 = scalar_lea.vmem %s2105_s9, 4096  ;;  %p2107_p12 = scmp.lt.s32.totalorder %s2658_s16, %s2105_s9 }
  0x9c   : > { %527 = vmatpush1.bf16.msra.mxu0 %v1899_v12  ;;  %v1970_v2 = vld [vmem:[#allocation8 + $0x60] sm:$0xff]   ;;  %v1974_v5 = vld [vmem:[#allocation8 + $0x28] sm:$0xff]   ;;  %v1977_v6 = vld [vmem:[#allocation8 + $0x70] sm:$0xff]   ;;  %v384_v12 = vsub.s32 1, %v2485_v9  ;;  %p2103_p7 = pneg %p2102_p3  ;;  %p2108_p2 = scmp.lt.s32.totalorder %s2106_s14, %s2100_s30 }
  0x9d   : > { %528 = vmatprep.subr.bf16.mxu0 %v1900_v13  ;;  %890 = vmatpush1.bf16.msra.mxu1 %v1928_v27  ;;  %v1971_v3 = vld [vmem:[#allocation8 + $0x20] sm:$0xff]   ;;  %v1978_v7 = vld [vmem:[#allocation8 + $0x30] sm:$0xff]  }
  0x9e   : > { %891 = vmatprep.subr.bf16.mxu1 %v1929_v28  ;;  %v376_v11 = vld [vmem:[%s2706_s2] sm:$0x3]  ;;  %p2109_p1 = por %p2108_p2, %p2107_p12 }
  0x9f   : > { %v2494_v13 = vrot.slane %v376_v11, %v380_v10  ;;  %v2498_v14 = vrot.slane %v376_v11, %v384_v12 }
  0xa0   : > { %529 = vmatpush1.bf16.msra.mxu0 %v1902_v18  ;;  %p2110_p4 = pnand %p2109_p1, %p2103_p7 }
  0xa1   : > { %530 = vmatprep.subr.bf16.mxu0 %v1903_v20  ;;  %892 = vmatpush1.bf16.msra.mxu1 %v1931_v30 }
  0xa2   : > { %893 = vmatprep.subr.bf16.mxu1 %v1932_v31 }
  0xa4   : > { %531 = vmatpush1.bf16.msra.mxu0 %v1905_v22 }
  0xa5   : > { %894 = vmatpush1.bf16.msra.mxu1 %v1934_v32  ;;  %1686 = vmatprep.subr.bf16.mxu0 %v1962_v57 }
  0xa6   : > { %895 = vmatprep.subr.bf16.mxu1 %v1935_v33 }
  0xa7   : > { %549 = vmatmul.mubr.bf16.vlgmr.msra.gmra.mrb[0].mxu0 %v2447_v24 }
  0xa8   : > { %558 = vmatprep.mubr.bf16.mxu0 %v2184_v0  ;;  %1687 = vmatpush3.bf16.msra.mxu0 %v1963_v58 }
  0xa9   : > { %896 = vmatpush1.bf16.msra.mxu1 %v1937_v35  ;;  %1688 = vmatprep.subr.bf16.mxu0 %v1964_v59  ;;  %v1975_v35 = vld [vmem:[#allocation8 + $0x88] sm:$0xff]  }
  0xaa   : > { %897 = vmatprep.subr.bf16.mxu1 %v1938_v36 }
  0xac   : > { %1689 = vmatpush3.bf16.msra.mxu0 %v1965_v60 }
  0xad   : > { %898 = vmatpush1.bf16.msra.mxu1 %v1940_v37  ;;  %1690 = vmatprep.subr.bf16.mxu0 %v1966_v62 }
  0xae   : > { %899 = vmatprep.subr.bf16.mxu1 %v1941_v38 }
  0xaf   : > { %559 = vmatmul.mubr.bf16.gmra.mrb[4].mxu0 %v2452_v29 }
  0xb0   : > { %568 = vmatprep.mubr.bf16.mxu0 %v2184_v0  ;;  %1691 = vmatpush3.bf16.msra.mxu0 %v1967_v63 }
  0xb1   : > { %900 = vmatpush1.bf16.msra.mxu1 %v1943_v40 }
  0xb2   : > { %901 = vmatprep.subr.bf16.mxu1 %v1944_v41 }
  0xb5   : > { %902 = vmatpush1.bf16.msra.mxu1 %v1946_v42 }
  0xb6   : > { %903 = vmatprep.subr.bf16.mxu1 %v1947_v43 }
  0xb7   : > { %569 = vmatmul.mubr.bf16.gmra.mrb[8].mxu0 %v2457_v34 }
  0xb8   : > { %578 = vmatprep.mubr.bf16.mxu0 %v2184_v0 }
  0xb9   : > { %904 = vmatpush1.bf16.msra.mxu1 %v1949_v45  ;;  %v1976_v45 = vld [vmem:[#allocation8 + $0x90] sm:$0xff]  }
  0xba   : > { %905 = vmatprep.subr.bf16.mxu1 %v1950_v46 }
  0xbd   : > { %906 = vmatpush1.bf16.msra.mxu1 %v1952_v47 }
  0xbe   : > { %907 = vmatprep.subr.bf16.mxu1 %v1953_v48 }
  0xbf   : > { %579 = vmatmul.mubr.bf16.gmra.mrb[12].mxu0 %v2462_v39 }
  0xc0   : > { %588 = vmatprep.mubr.bf16.mxu0 %v2184_v0 }
  0xc1   : > { %908 = vmatpush1.bf16.msra.mxu1 %v1955_v52 }
  0xc2   : > { %909 = vmatprep.subr.bf16.mxu1 %v1956_v53 }
  0xc5   : > { %910 = vmatpush1.bf16.msra.mxu1 %v1958_v54 }
  0xc6   : > { %911 = vmatprep.subr.bf16.mxu1 %v1959_v55 }
  0xc7   : > { %589 = vmatmul.mubr.bf16.gmra.mrb[16].mxu0 %v2467_v44 }
  0xc8   : > { %598 = vmatprep.mubr.bf16.mxu0 %v2184_v0 }
  0xc9   : > { %912 = vmatpush1.bf16.msra.mxu1 %v1961_v56  ;;  %v1979_v56 = vld [vmem:[#allocation8 + $0x98] sm:$0xff]  }
  0xca   : > { %1766 = vmatprep.subr.bf16.mxu1 %v1972_v61 }
  0xcf   : > { %599 = vmatmul.mubr.bf16.gmra.mrb[20].mxu0 %v2472_v49 }
  0xd0   : > { %608 = vmatprep.mubr.bf16.mxu0 %v2184_v0 }
  0xd7   : > { %609 = vmatmul.mubr.bf16.gmra.mrb[24].mxu0 %v2477_v50 }
  0xd8   : > { %618 = vmatprep.mubr.bf16.mxu0 %v2184_v0  ;;  %v1968_v0 = vld [vmem:[#allocation8 + $0x58] sm:$0xff]  }
  0xd9   : > { %1692 = vmatprep.subr.bf16.mxu0 %v1968_v0  ;;  %v1980_v0 = vld [vmem:[#allocation8 + $0xa0] sm:$0xff]  }
  0xda   : > { %1693 = vmatpush3.bf16.msra.mxu0 %v1969_v1 }
  0xdb   : > { %1694 = vmatprep.subr.bf16.mxu0 %v1970_v2 }
  0xde   : > { %1695 = vmatpush3.bf16.msra.mxu0 %v1971_v3 }
  0xdf   : > { %619 = vmatmul.mubr.bf16.gmra.mrb[28].mxu0 %v2482_v51  ;;  %1696 = vmatprep.subr.bf16.mxu0 %v1973_v4 }
  0xe2   : > { %1697 = vmatpush3.bf16.msra.mxu0 %v1974_v5 }
  0xe3   : > { %1698 = vmatprep.subr.bf16.mxu0 %v1977_v6 }
  0xe6   : > { %1699 = vmatpush3.bf16.msra.mxu0 %v1978_v7 }
 0x17a   : > { %v550_v15 = vpop.f32.mrb[0].mxu0 }
 0x17b   : > { %v551_v16 = vadd.f32 %v550_v15, %v2494_v13  ;;  %v552_v17 = vpop.f32.mrb[1].mxu0 }
 0x17c   : > { %v553_v18 = vadd.f32 %v552_v17, %v2498_v14  ;;  %v554_v19 = vpop.f32.mrb[2].mxu0 }
 0x17d   : > { %v555_v20 = vadd.f32 %v554_v19, %v2494_v13  ;;  %v556_v21 = vpop.f32.mrb[3].mxu0  ;;  %v629_v23 = vmax.f32 %v551_v16, 0.0 }
 0x17e   : > { %v557_v22 = vadd.f32 %v556_v21, %v2498_v14  ;;  %v630_v26 = vmax.f32 %v553_v18, 0.0 }
 0x17f   : > { %v631_v25 = vmax.f32 %v555_v20, 0.0 }
 0x180   : > { %v632_v27 = vmax.f32 %v557_v22, 0.0 }
 0x181   : > { %v661_v28 = vpack.c.bf16 %v631_v25, %v629_v23 }
 0x182   : > { %v560_v30 = vpop.f32.mrb[4].mxu0  ;;  %v662_v31 = vpack.c.bf16 %v632_v27, %v630_v26 }
 0x183   : > { %v561_v32 = vadd.f32 %v560_v30, %v2494_v13  ;;  %v562_v33 = vpop.f32.mrb[5].mxu0 }
 0x184   : > { %v563_v36 = vadd.f32 %v562_v33, %v2498_v14  ;;  %v564_v37 = vpop.f32.mrb[6].mxu0  ;;  %913 = vmatprep.mubr.bf16.mxu1 %v662_v31 }
 0x185   : > { %v565_v38 = vadd.f32 %v564_v37, %v2494_v13  ;;  %v566_v40 = vpop.f32.mrb[7].mxu0  ;;  %914 = vmatmul.mubr.bf16.vlgmr.msra.gmra.mrb[0].mxu1 %v661_v28  ;;  %v633_v42 = vmax.f32 %v561_v32, 0.0 }
 0x186   : > { %v567_v41 = vadd.f32 %v566_v40, %v2498_v14  ;;  %1767 = vmatpush3.bf16.msra.mxu1 %v1972_v61  ;;  %v634_v46 = vmax.f32 %v563_v36, 0.0 }
 0x187   : > { %v635_v43 = vmax.f32 %v565_v38, 0.0  ;;  %1768 = vmatprep.subr.bf16.mxu1 %v1975_v35 }
 0x188   : > { %v636_v47 = vmax.f32 %v567_v41, 0.0 }
 0x189   : > { %v663_v48 = vpack.c.bf16 %v635_v43, %v633_v42 }
 0x18a   : > { %v664_v52 = vpack.c.bf16 %v636_v47, %v634_v46  ;;  %v570_v53 = vpop.f32.mrb[8].mxu0  ;;  %1769 = vmatpush3.bf16.msra.mxu1 %v1975_v35 }
 0x18b   : > { %v571_v54 = vadd.f32 %v570_v53, %v2494_v13  ;;  %v572_v55 = vpop.f32.mrb[9].mxu0  ;;  %1770 = vmatprep.subr.bf16.mxu1 %v1976_v45 }
 0x18c   : > { %v573_v57 = vadd.f32 %v572_v55, %v2498_v14  ;;  %v574_v58 = vpop.f32.mrb[10].mxu0  ;;  %923 = vmatprep.mubr.bf16.mxu1 %v664_v52 }
 0x18d   : > { %v575_v59 = vadd.f32 %v574_v58, %v2494_v13  ;;  %v576_v60 = vpop.f32.mrb[11].mxu0  ;;  %924 = vmatmul.mubr.bf16.gmra.mrb[4].mxu1 %v663_v48  ;;  %v637_v62 = vmax.f32 %v571_v54, 0.0 }
 0x18e   : > { %v577_v61 = vadd.f32 %v576_v60, %v2498_v14  ;;  %1771 = vmatpush3.bf16.msra.mxu1 %v1976_v45  ;;  %v638_v1 = vmax.f32 %v573_v57, 0.0 }
 0x18f   : > { %v639_v63 = vmax.f32 %v575_v59, 0.0  ;;  %1772 = vmatprep.subr.bf16.mxu1 %v1979_v56 }
 0x190   : > { %v640_v2 = vmax.f32 %v577_v61, 0.0 }
 0x191   : > { %v665_v3 = vpack.c.bf16 %v639_v63, %v637_v62 }
 0x192   : > { %v666_v4 = vpack.c.bf16 %v640_v2, %v638_v1  ;;  %v580_v5 = vpop.f32.mrb[12].mxu0  ;;  %1773 = vmatpush3.bf16.msra.mxu1 %v1979_v56 }
 0x193   : > { %v581_v6 = vadd.f32 %v580_v5, %v2494_v13  ;;  %v582_v7 = vpop.f32.mrb[13].mxu0  ;;  %1774 = vmatprep.subr.bf16.mxu1 %v1980_v0 }
 0x194   : > { %v583_v8 = vadd.f32 %v582_v7, %v2498_v14  ;;  %v584_v11 = vpop.f32.mrb[14].mxu0  ;;  %933 = vmatprep.mubr.bf16.mxu1 %v666_v4 }
 0x195   : > { %v585_v15 = vadd.f32 %v584_v11, %v2494_v13  ;;  %v586_v16 = vpop.f32.mrb[15].mxu0  ;;  %934 = vmatmul.mubr.bf16.gmra.mrb[8].mxu1 %v665_v3  ;;  %v641_v18 = vmax.f32 %v581_v6, 0.0 }
 0x196   : > { %v587_v17 = vadd.f32 %v586_v16, %v2498_v14  ;;  %1775 = vmatpush3.bf16.msra.mxu1 %v1980_v0  ;;  %v642_v20 = vmax.f32 %v583_v8, 0.0 }
 0x197   : > { %v643_v19 = vmax.f32 %v585_v15, 0.0 }
 0x198   : > { %v644_v21 = vmax.f32 %v587_v17, 0.0 }
 0x199   : > { %v667_v22 = vpack.c.bf16 %v643_v19, %v641_v18 }
 0x19a   : > { %v668_v23 = vpack.c.bf16 %v644_v21, %v642_v20  ;;  %v590_v25 = vpop.f32.mrb[16].mxu0 }
 0x19b   : > { %v591_v26 = vadd.f32 %v590_v25, %v2494_v13  ;;  %v592_v27 = vpop.f32.mrb[17].mxu0 }
 0x19c   : > { %v593_v28 = vadd.f32 %v592_v27, %v2498_v14  ;;  %v594_v30 = vpop.f32.mrb[18].mxu0  ;;  %943 = vmatprep.mubr.bf16.mxu1 %v668_v23 }
 0x19d   : > { %v595_v31 = vadd.f32 %v594_v30, %v2494_v13  ;;  %v596_v32 = vpop.f32.mrb[19].mxu0  ;;  %944 = vmatmul.mubr.bf16.gmra.mrb[12].mxu1 %v667_v22  ;;  %v645_v35 = vmax.f32 %v591_v26, 0.0 }
 0x19e   : > { %v597_v33 = vadd.f32 %v596_v32, %v2498_v14  ;;  %v646_v37 = vmax.f32 %v593_v28, 0.0  ;;  %v1981_v32 = vld [vmem:[#allocation8 + $0x78] sm:$0xff]  }
 0x19f   : > { %v647_v36 = vmax.f32 %v595_v31, 0.0  ;;  %v1983_v31 = vld [vmem:[#allocation8 + $0xa8] sm:$0xff]   ;;  %1700 = vmatprep.subr.bf16.mxu0 %v1981_v32 }
 0x1a0   : > { %v648_v38 = vmax.f32 %v597_v33, 0.0  ;;  %1776 = vmatprep.subr.bf16.mxu1 %v1983_v31  ;;  %v1984_v33 = vld [vmem:[#allocation8 + $0xb0] sm:$0xff]  }
 0x1a1   : > { %v669_v40 = vpack.c.bf16 %v647_v36, %v645_v35  ;;  %1777 = vmatpush3.bf16.msra.mxu1 %v1983_v31 }
 0x1a2   : > { %v670_v41 = vpack.c.bf16 %v648_v38, %v646_v37  ;;  %v600_v42 = vpop.f32.mrb[20].mxu0  ;;  %1778 = vmatprep.subr.bf16.mxu1 %v1984_v33 }
 0x1a3   : > { %v601_v43 = vadd.f32 %v600_v42, %v2494_v13  ;;  %v602_v45 = vpop.f32.mrb[21].mxu0 }
 0x1a4   : > { %v603_v46 = vadd.f32 %v602_v45, %v2498_v14  ;;  %v604_v47 = vpop.f32.mrb[22].mxu0  ;;  %953 = vmatprep.mubr.bf16.mxu1 %v670_v41 }
 0x1a5   : > { %v605_v48 = vadd.f32 %v604_v47, %v2494_v13  ;;  %v606_v52 = vpop.f32.mrb[23].mxu0  ;;  %954 = vmatmul.mubr.bf16.gmra.mrb[16].mxu1 %v669_v40  ;;  %v649_v54 = vmax.f32 %v601_v43, 0.0 }
 0x1a6   : > { %v607_v53 = vadd.f32 %v606_v52, %v2498_v14  ;;  %v650_v56 = vmax.f32 %v603_v46, 0.0  ;;  %1779 = vmatpush3.bf16.msra.mxu1 %v1984_v33 }
 0x1a7   : > { %v651_v55 = vmax.f32 %v605_v48, 0.0 }
 0x1a8   : > { %v652_v57 = vmax.f32 %v607_v53, 0.0 }
 0x1a9   : > { %v671_v58 = vpack.c.bf16 %v651_v55, %v649_v54 }
 0x1aa   : > { %v672_v59 = vpack.c.bf16 %v652_v57, %v650_v56  ;;  %v610_v60 = vpop.f32.mrb[24].mxu0 }
 0x1ab   : > { %v611_v61 = vadd.f32 %v610_v60, %v2494_v13  ;;  %v612_v62 = vpop.f32.mrb[25].mxu0 }
 0x1ac   : > { %v613_v63 = vadd.f32 %v612_v62, %v2498_v14  ;;  %v614_v0 = vpop.f32.mrb[26].mxu0  ;;  %963 = vmatprep.mubr.bf16.mxu1 %v672_v59 }
 0x1ad   : > { %v615_v1 = vadd.f32 %v614_v0, %v2494_v13  ;;  %v616_v2 = vpop.f32.mrb[27].mxu0  ;;  %964 = vmatmul.mubr.bf16.gmra.mrb[20].mxu1 %v671_v58  ;;  %v653_v4 = vmax.f32 %v611_v61, 0.0 }
 0x1ae   : > { %v617_v3 = vadd.f32 %v616_v2, %v2498_v14  ;;  %v654_v6 = vmax.f32 %v613_v63, 0.0 }
 0x1af   : > { %v655_v5 = vmax.f32 %v615_v1, 0.0 }
 0x1b0   : > { %v656_v7 = vmax.f32 %v617_v3, 0.0 }
 0x1b1   : > { %v673_v8 = vpack.c.bf16 %v655_v5, %v653_v4 }
 0x1b2   : > { %v674_v11 = vpack.c.bf16 %v656_v7, %v654_v6  ;;  %v620_v15 = vpop.f32.mrb[28].mxu0 }
 0x1b3   : > { %v621_v16 = vadd.f32 %v620_v15, %v2494_v13  ;;  %v622_v17 = vpop.f32.mrb[29].mxu0 }
 0x1b4   : > { %v623_v18 = vadd.f32 %v622_v17, %v2498_v14  ;;  %v624_v19 = vpop.f32.mrb[30].mxu0  ;;  %973 = vmatprep.mubr.bf16.mxu1 %v674_v11 }
 0x1b5   : > { %v625_v20 = vadd.f32 %v624_v19, %v2494_v13  ;;  %v626_v21 = vpop.f32.mrb[31].mxu0  ;;  %974 = vmatmul.mubr.bf16.gmra.mrb[24].mxu1 %v673_v8  ;;  %v657_v23 = vmax.f32 %v621_v16, 0.0  ;;  %v1982_v13 = vld [vmem:[#allocation8 + $0x38] sm:$0xff]  }
 0x1b6   : > { %v627_v22 = vadd.f32 %v626_v21, %v2498_v14  ;;  %v658_v26 = vmax.f32 %v623_v18, 0.0  ;;  %1701 = vmatpush3.bf16.msra.mxu0 %v1982_v13  ;;  %v1985_v14 = vld [vmem:[#allocation8 + $0xb8] sm:$0xff]  }
 0x1b7   : > { %v659_v25 = vmax.f32 %v625_v20, 0.0  ;;  %1780 = vmatprep.subr.bf16.mxu1 %v1985_v14 }
 0x1b8   : > { %v660_v27 = vmax.f32 %v627_v22, 0.0  ;;  %1781 = vmatpush3.bf16.msra.mxu1 %v1985_v14 }
 0x1b9   : > { %v675_v28 = vpack.c.bf16 %v659_v25, %v657_v23 }
 0x1ba   : > { %v676_v30 = vpack.c.bf16 %v660_v27, %v658_v26 }
 0x1bc   : > { %983 = vmatprep.mubr.bf16.mxu1 %v676_v30 }
 0x1bd   : > { %984 = vmatmul.mubr.bf16.gmra.mrb[28].mxu1 %v675_v28 }
 0x1be   : > { %1782 = vmatprep.mubr.bf16.mxu1 %v2447_v24  ;;  %v709_v24 = vld [vmem:[%s2708_s4] sm:$0x3] }
 0x1bf   : > { %v2545_v35 = vrot.slane %v709_v24, %v380_v10 }
 0x1c5   : > { %1783 = vmatmul.mubr.bf16.vlgmr.msra.gmra.mrb[32].mxu1 %v2452_v29  ;;  %v2549_v29 = vrot.slane %v709_v24, %v384_v12 }
 0x1c6   : > { %1786 = vmatprep.mubr.bf16.mxu1 %v2457_v34 }
 0x1cd   : > { %1787 = vmatmul.mubr.bf16.gmra.mrb[36].mxu1 %v2462_v39 }
 0x1ce   : > { %1790 = vmatprep.mubr.bf16.mxu1 %v2467_v44 }
 0x1d5   : > { %1791 = vmatmul.mubr.bf16.gmra.mrb[40].mxu1 %v2472_v49 }
 0x1d6   : > { %1794 = vmatprep.mubr.bf16.mxu1 %v2477_v50 }
 0x1dd   : > { %1795 = vmatmul.mubr.bf16.gmra.mrb[44].mxu1 %v2482_v51 }
 0x258   : > { %v915_v34 = vpop.f32.mrb[0].mxu1 }
 0x259   : > { %v916_v39 = vadd.f32 %v915_v34, %v2545_v35  ;;  %v917_v44 = vpop.f32.mrb[1].mxu1 }
 0x25a   : > { %v918_v49 = vadd.f32 %v917_v44, %v2549_v29  ;;  %v919_v50 = vpop.f32.mrb[2].mxu1 }
 0x25b   : > { %v920_v51 = vadd.f32 %v919_v50, %v2545_v35  ;;  %v921_v36 = vpop.f32.mrb[3].mxu1  ;;  %v994_v38 = vmax.f32 %v916_v39, 0.0 }
 0x25c   : > { %v922_v37 = vadd.f32 %v921_v36, %v2549_v29  ;;  %v995_v10 = vmax.f32 %v918_v49, 0.0 }
 0x25d   : > { %v996_v40 = vmax.f32 %v920_v51, 0.0 }
 0x25e   : > { %v997_v41 = vmax.f32 %v922_v37, 0.0 }
 0x25f   : > { %v1026_v42 = vpack.c.bf16 %v996_v40, %v994_v38 }
 0x260   : > { %v1027_v9 = vpack.c.bf16 %v997_v41, %v995_v10  ;;  %v925_v12 = vpop.f32.mrb[4].mxu1 }
 0x261   : > { %v926_v43 = vadd.f32 %v925_v12, %v2545_v35  ;;  %v927_v45 = vpop.f32.mrb[5].mxu1 }
 0x262   : > { %v928_v46 = vadd.f32 %v927_v45, %v2549_v29  ;;  %v929_v47 = vpop.f32.mrb[6].mxu1  ;;  %1273 = vmatprep.mubr.bf16.mxu0 %v1027_v9 }
 0x263   : > { %v930_v48 = vadd.f32 %v929_v47, %v2545_v35  ;;  %v931_v52 = vpop.f32.mrb[7].mxu1  ;;  %1274 = vmatmul.mubr.bf16.vlgmr.msra.gmra.mrb[32].mxu0 %v1026_v42  ;;  %v998_v54 = vmax.f32 %v926_v43, 0.0 }
 0x264   : > { %v932_v53 = vadd.f32 %v931_v52, %v2549_v29  ;;  %v999_v56 = vmax.f32 %v928_v46, 0.0 }
 0x265   : > { %v1000_v55 = vmax.f32 %v930_v48, 0.0 }
 0x266   : > { %v1001_v57 = vmax.f32 %v932_v53, 0.0 }
 0x267   : > { %v1028_v58 = vpack.c.bf16 %v1000_v55, %v998_v54 }
 0x268   : > { %v1029_v59 = vpack.c.bf16 %v1001_v57, %v999_v56  ;;  %v935_v60 = vpop.f32.mrb[8].mxu1 }
 0x269   : > { %v936_v61 = vadd.f32 %v935_v60, %v2545_v35  ;;  %v937_v62 = vpop.f32.mrb[9].mxu1 }
 0x26a   : > { %v938_v63 = vadd.f32 %v937_v62, %v2549_v29  ;;  %v939_v0 = vpop.f32.mrb[10].mxu1  ;;  %1281 = vmatprep.mubr.bf16.mxu0 %v1029_v59 }
 0x26b   : > { %v940_v1 = vadd.f32 %v939_v0, %v2545_v35  ;;  %v941_v2 = vpop.f32.mrb[11].mxu1  ;;  %1282 = vmatmul.mubr.bf16.gmra.mrb[36].mxu0 %v1028_v58  ;;  %v1002_v4 = vmax.f32 %v936_v61, 0.0 }
 0x26c   : > { %v942_v3 = vadd.f32 %v941_v2, %v2549_v29  ;;  %v1003_v6 = vmax.f32 %v938_v63, 0.0 }
 0x26d   : > { %v1004_v5 = vmax.f32 %v940_v1, 0.0 }
 0x26e   : > { %v1005_v7 = vmax.f32 %v942_v3, 0.0 }
 0x26f   : > { %v1030_v8 = vpack.c.bf16 %v1004_v5, %v1002_v4 }
 0x270   : > { %v1031_v11 = vpack.c.bf16 %v1005_v7, %v1003_v6  ;;  %v945_v15 = vpop.f32.mrb[12].mxu1 }
 0x271   : > { %v946_v16 = vadd.f32 %v945_v15, %v2545_v35  ;;  %v947_v17 = vpop.f32.mrb[13].mxu1 }
 0x272   : > { %v948_v18 = vadd.f32 %v947_v17, %v2549_v29  ;;  %v949_v19 = vpop.f32.mrb[14].mxu1  ;;  %1289 = vmatprep.mubr.bf16.mxu0 %v1031_v11 }
 0x273   : > { %v950_v20 = vadd.f32 %v949_v19, %v2545_v35  ;;  %v951_v21 = vpop.f32.mrb[15].mxu1  ;;  %1290 = vmatmul.mubr.bf16.gmra.mrb[40].mxu0 %v1030_v8  ;;  %v1006_v23 = vmax.f32 %v946_v16, 0.0 }
 0x274   : > { %v952_v22 = vadd.f32 %v951_v21, %v2549_v29  ;;  %v1007_v26 = vmax.f32 %v948_v18, 0.0 }
 0x275   : > { %v1008_v25 = vmax.f32 %v950_v20, 0.0 }
 0x276   : > { %v1009_v27 = vmax.f32 %v952_v22, 0.0 }
 0x277   : > { %v1032_v28 = vpack.c.bf16 %v1008_v25, %v1006_v23 }
 0x278   : > { %v1033_v30 = vpack.c.bf16 %v1009_v27, %v1007_v26  ;;  %v955_v31 = vpop.f32.mrb[16].mxu1 }
 0x279   : > { %v956_v32 = vadd.f32 %v955_v31, %v2545_v35  ;;  %v957_v33 = vpop.f32.mrb[17].mxu1 }
 0x27a   : > { %v958_v13 = vadd.f32 %v957_v33, %v2549_v29  ;;  %v959_v14 = vpop.f32.mrb[18].mxu1  ;;  %1297 = vmatprep.mubr.bf16.mxu0 %v1033_v30 }
 0x27b   : > { %v960_v24 = vadd.f32 %v959_v14, %v2545_v35  ;;  %v961_v34 = vpop.f32.mrb[19].mxu1  ;;  %1298 = vmatmul.mubr.bf16.gmra.mrb[44].mxu0 %v1032_v28  ;;  %v1010_v44 = vmax.f32 %v956_v32, 0.0 }
 0x27c   : > { %v962_v39 = vadd.f32 %v961_v34, %v2549_v29  ;;  %v1011_v50 = vmax.f32 %v958_v13, 0.0 }
 0x27d   : > { %v1012_v49 = vmax.f32 %v960_v24, 0.0 }
 0x27e   : > { %v1013_v51 = vmax.f32 %v962_v39, 0.0 }
 0x27f   : > { %v1034_v36 = vpack.c.bf16 %v1012_v49, %v1010_v44 }
 0x280   : > { %v1035_v37 = vpack.c.bf16 %v1013_v51, %v1011_v50  ;;  %v965_v38 = vpop.f32.mrb[20].mxu1  ;;  %v2606_v50 = vld [vmem:[%s2710_s6] ss:$0 sm:$0xff] }
 0x281   : > { %v966_v40 = vadd.f32 %v965_v38, %v2545_v35  ;;  %v967_v10 = vpop.f32.mrb[21].mxu1 }
 0x282   : > { %v968_v41 = vadd.f32 %v967_v10, %v2549_v29  ;;  %v969_v42 = vpop.f32.mrb[22].mxu1  ;;  %1305 = vmatprep.mubr.bf16.mxu0 %v1035_v37 }
 0x283   : > { %v970_v9 = vadd.f32 %v969_v42, %v2545_v35  ;;  %v971_v12 = vpop.f32.mrb[23].mxu1  ;;  %1306 = vmatmul.mubr.bf16.gmra.mrb[48].mxu0 %v1034_v36  ;;  %v1014_v45 = vmax.f32 %v966_v40, 0.0 }
 0x284   : > { %v972_v43 = vadd.f32 %v971_v12, %v2549_v29  ;;  %v1015_v47 = vmax.f32 %v968_v41, 0.0 }
 0x285   : > { %v1016_v46 = vmax.f32 %v970_v9, 0.0 }
 0x286   : > { %v1017_v48 = vmax.f32 %v972_v43, 0.0 }
 0x287   : > { %v1036_v52 = vpack.c.bf16 %v1016_v46, %v1014_v45 }
 0x288   : > { %v1037_v53 = vpack.c.bf16 %v1017_v48, %v1015_v47  ;;  %v975_v54 = vpop.f32.mrb[24].mxu1 }
 0x289   : > { %v976_v55 = vadd.f32 %v975_v54, %v2545_v35  ;;  %v977_v56 = vpop.f32.mrb[25].mxu1 }
 0x28a   : > { %v978_v57 = vadd.f32 %v977_v56, %v2549_v29  ;;  %v979_v58 = vpop.f32.mrb[26].mxu1  ;;  %1313 = vmatprep.mubr.bf16.mxu0 %v1037_v53 }
 0x28b   : > { %v980_v59 = vadd.f32 %v979_v58, %v2545_v35  ;;  %v981_v60 = vpop.f32.mrb[27].mxu1  ;;  %1314 = vmatmul.mubr.bf16.gmra.mrb[52].mxu0 %v1036_v52  ;;  %v1018_v62 = vmax.f32 %v976_v55, 0.0 }
 0x28c   : > { %v982_v61 = vadd.f32 %v981_v60, %v2549_v29  ;;  %v1019_v0 = vmax.f32 %v978_v57, 0.0 }
 0x28d   : > { %v1020_v63 = vmax.f32 %v980_v59, 0.0 }
 0x28e   : > { %v1021_v1 = vmax.f32 %v982_v61, 0.0 }
 0x28f   : > { %v1038_v2 = vpack.c.bf16 %v1020_v63, %v1018_v62 }
 0x290   : > { %v1039_v3 = vpack.c.bf16 %v1021_v1, %v1019_v0  ;;  %v985_v4 = vpop.f32.mrb[28].mxu1 }
 0x291   : > { %v986_v5 = vadd.f32 %v985_v4, %v2545_v35  ;;  %v987_v6 = vpop.f32.mrb[29].mxu1 }
 0x292   : > { %v988_v7 = vadd.f32 %v987_v6, %v2549_v29  ;;  %v989_v8 = vpop.f32.mrb[30].mxu1  ;;  %1321 = vmatprep.mubr.bf16.mxu0 %v1039_v3 }
 0x293   : > { %v990_v11 = vadd.f32 %v989_v8, %v2545_v35  ;;  %v991_v15 = vpop.f32.mrb[31].mxu1  ;;  %1322 = vmatmul.mubr.bf16.gmra.mrb[56].mxu0 %v1038_v2  ;;  %v1022_v17 = vmax.f32 %v986_v5, 0.0 }
 0x294   : > { %v992_v16 = vadd.f32 %v991_v15, %v2549_v29  ;;  %v1023_v19 = vmax.f32 %v988_v7, 0.0 }
 0x295   : > { %v1024_v18 = vmax.f32 %v990_v11, 0.0 }
 0x296   : > { %v1025_v20 = vmax.f32 %v992_v16, 0.0 }
 0x297   : > { %v1040_v21 = vpack.c.bf16 %v1024_v18, %v1022_v17 }
 0x298   : > { %v1041_v22 = vpack.c.bf16 %v1025_v20, %v1023_v19  ;;  %v1784_v23 = vpop.f32.mrb[32].mxu1 }
 0x299   : > { %v1372_v25 = vpop.f32.mrb[33].mxu1 }
 0x29a   : > { %1329 = vmatprep.mubr.bf16.mxu0 %v1041_v22  ;;  %v1785_v26 = vpop.f32.mrb[34].mxu1 }
 0x29b   : > { %1330 = vmatmul.mubr.bf16.gmra.mrb[60].mxu0 %v1040_v21  ;;  %v1375_v27 = vpop.f32.mrb[35].mxu1 }
 0x2a0   : > { %v2583_v28 = vpop.f32.mrb[36].mxu1 }
 0x2a1   : > { %v1388_v30 = vpop.f32.mrb[37].mxu1 }
 0x2a2   : > { %v2585_v35 = vpop.f32.mrb[38].mxu1 }
 0x2a3   : > { %v1391_v31 = vpop.f32.mrb[39].mxu1 }
 0x2a8   : > { %v2587_v29 = vpop.f32.mrb[40].mxu1 }
 0x2a9   : > { %v2589_v32 = vpop.f32.mrb[41].mxu1 }
 0x2aa   : > { %v2591_v33 = vpop.f32.mrb[42].mxu1 }
 0x2ab   : > { %v2593_v13 = vpop.f32.mrb[43].mxu1 }
 0x2b0   : > { %v2595_v14 = vpop.f32.mrb[44].mxu1 }
 0x2b1   : > { %v2597_v24 = vpop.f32.mrb[45].mxu1 }
 0x2b2   : > { %v2599_v34 = vpop.f32.mrb[46].mxu1 }
 0x2b3   : > { %v2601_v39 = vpop.f32.mrb[47].mxu1 }
 0x336   : > { %v1702_v44 = vpop.f32.mrb[32].mxu0 }
 0x337   : > { %v1703_v49 = vpop.f32.mrb[33].mxu0 }
 0x338   : > { %v1704_v51 = vadd.f32 %v1703_v49, %v1702_v44  ;;  %v1705_v36 = vpop.f32.mrb[34].mxu0 }
 0x339   : > { %v1706_v37 = vpop.f32.mrb[35].mxu0 }
 0x33a   : > { %v1707_v38 = vadd.f32 %v1706_v37, %v1705_v36  ;;  %v1276_v40 = vadd.f32 %v1704_v51, %v2606_v50 }
 0x33c   : > { %v1373_v10 = vadd.f32 %v1372_v25, %v1276_v40  ;;  %v1279_v41 = vadd.f32 %v1707_v38, %v2606_v50 }
 0x33e   : > { %v1435_v42 = vmax.f32 %v1373_v10, 0.0  ;;  %v1376_v9 = vadd.f32 %v1375_v27, %v1279_v41  ;;  %v1708_v12 = vpop.f32.mrb[36].mxu0 }
 0x33f   : > { %v1709_v43 = vpop.f32.mrb[37].mxu0 }
 0x340   : > { %1451 = vst [vmem:[%s2611_s17] sm:$0xff] %v1435_v42  ;;  %v1436_v45 = vmax.f32 %v1376_v9, 0.0  ;;  %v1710_v46 = vadd.f32 %v1709_v43, %v1708_v12  ;;  %v1711_v47 = vpop.f32.mrb[38].mxu0 }
 0x341   : > { %v1712_v48 = vpop.f32.mrb[39].mxu0 }
 0x342   : > { %1452 = vst [vmem:[%s2611_s17 + $0x8] sm:$0xff] %v1436_v45  ;;  %v1284_v52 = vadd.f32 %v1710_v46, %v2606_v50  ;;  %v1713_v53 = vadd.f32 %v1712_v48, %v1711_v47 }
 0x344   : > { %v1381_v54 = vadd.f32 %v1784_v23, %v1284_v52  ;;  %v1287_v55 = vadd.f32 %v1713_v53, %v2606_v50 }
 0x346   : > { %v1437_v56 = vmax.f32 %v1381_v54, 0.0  ;;  %v1384_v57 = vadd.f32 %v1785_v26, %v1287_v55  ;;  %v1714_v58 = vpop.f32.mrb[40].mxu0 }
 0x347   : > { %v1715_v59 = vpop.f32.mrb[41].mxu0 }
 0x348   : > { %1453 = vst [vmem:[%s2611_s17 + $0x10] sm:$0xff] %v1437_v56  ;;  %v1438_v60 = vmax.f32 %v1384_v57, 0.0  ;;  %v1716_v61 = vadd.f32 %v1715_v59, %v1714_v58  ;;  %v1717_v62 = vpop.f32.mrb[42].mxu0 }
 0x349   : > { %v1718_v63 = vpop.f32.mrb[43].mxu0 }
 0x34a   : > { %1454 = vst [vmem:[%s2611_s17 + $0x18] sm:$0xff] %v1438_v60  ;;  %v1719_v0 = vadd.f32 %v1718_v63, %v1717_v62  ;;  %v1292_v1 = vadd.f32 %v1716_v61, %v2606_v50 }
 0x34c   : > { %v1389_v2 = vadd.f32 %v1388_v30, %v1292_v1  ;;  %v1295_v3 = vadd.f32 %v1719_v0, %v2606_v50 }
 0x34e   : > { %v1439_v4 = vmax.f32 %v1389_v2, 0.0  ;;  %v1392_v5 = vadd.f32 %v1391_v31, %v1295_v3  ;;  %v1720_v6 = vpop.f32.mrb[44].mxu0 }
 0x34f   : > { %v1721_v7 = vpop.f32.mrb[45].mxu0 }
 0x350   : > { %1455 = vst [vmem:[%s2611_s17 + $0x20] sm:$0xff] %v1439_v4  ;;  %v1440_v8 = vmax.f32 %v1392_v5, 0.0  ;;  %v1722_v11 = vadd.f32 %v1721_v7, %v1720_v6  ;;  %v1723_v15 = vpop.f32.mrb[46].mxu0 }
 0x351   : > { %v1724_v16 = vpop.f32.mrb[47].mxu0 }
 0x352   : > { %1456 = vst [vmem:[%s2611_s17 + $0x28] sm:$0xff] %v1440_v8  ;;  %v1300_v17 = vadd.f32 %v1722_v11, %v2606_v50  ;;  %v1725_v18 = vadd.f32 %v1724_v16, %v1723_v15 }
 0x354   : > { %v1397_v19 = vadd.f32 %v2583_v28, %v1300_v17  ;;  %v1303_v20 = vadd.f32 %v1725_v18, %v2606_v50 }
 0x356   : > { %v1441_v21 = vmax.f32 %v1397_v19, 0.0  ;;  %v1400_v22 = vadd.f32 %v2585_v35, %v1303_v20  ;;  %v1726_v23 = vpop.f32.mrb[48].mxu0 }
 0x357   : > { %v1727_v25 = vpop.f32.mrb[49].mxu0 }
 0x358   : > { %1457 = vst [vmem:[%s2611_s17 + $0x30] sm:$0xff] %v1441_v21  ;;  %v1442_v26 = vmax.f32 %v1400_v22, 0.0  ;;  %v1728_v27 = vadd.f32 %v1727_v25, %v1726_v23  ;;  %v1729_v30 = vpop.f32.mrb[50].mxu0 }
 0x359   : > { %v1730_v31 = vpop.f32.mrb[51].mxu0 }
 0x35a   : > { %1458 = vst [vmem:[%s2611_s17 + $0x38] sm:$0xff] %v1442_v26  ;;  %v1731_v44 = vadd.f32 %v1730_v31, %v1729_v30  ;;  %v1308_v49 = vadd.f32 %v1728_v27, %v2606_v50 }
 0x35c   : > { %v1405_v28 = vadd.f32 %v2589_v32, %v1308_v49  ;;  %v1311_v51 = vadd.f32 %v1731_v44, %v2606_v50 }
 0x35e   : > { %v1443_v36 = vmax.f32 %v1405_v28, 0.0  ;;  %v1408_v35 = vadd.f32 %v2593_v13, %v1311_v51  ;;  %v1732_v37 = vpop.f32.mrb[52].mxu0 }
 0x35f   : > { %v1733_v38 = vpop.f32.mrb[53].mxu0 }
 0x360   : > { %1459 = vst [vmem:[%s2611_s17 + $0x40] sm:$0xff] %v1443_v36  ;;  %v1444_v40 = vmax.f32 %v1408_v35, 0.0  ;;  %v1734_v10 = vadd.f32 %v1733_v38, %v1732_v37  ;;  %v1735_v41 = vpop.f32.mrb[54].mxu0 }
 0x361   : > { %v1736_v42 = vpop.f32.mrb[55].mxu0 }
 0x362   : > { %1460 = vst [vmem:[%s2611_s17 + $0x48] sm:$0xff] %v1444_v40  ;;  %v1316_v9 = vadd.f32 %v1734_v10, %v2606_v50  ;;  %v1737_v12 = vadd.f32 %v1736_v42, %v1735_v41 }
 0x364   : > { %v1413_v32 = vadd.f32 %v2587_v29, %v1316_v9  ;;  %v1319_v43 = vadd.f32 %v1737_v12, %v2606_v50 }
 0x366   : > { %v1445_v45 = vmax.f32 %v1413_v32, 0.0  ;;  %v1416_v13 = vadd.f32 %v2591_v33, %v1319_v43  ;;  %v1738_v46 = vpop.f32.mrb[56].mxu0 }
 0x367   : > { %v1739_v47 = vpop.f32.mrb[57].mxu0 }
 0x368   : > { %1461 = vst [vmem:[%s2611_s17 + $0x50] sm:$0xff] %v1445_v45  ;;  %v1446_v48 = vmax.f32 %v1416_v13, 0.0  ;;  %v1740_v52 = vadd.f32 %v1739_v47, %v1738_v46  ;;  %v1741_v53 = vpop.f32.mrb[58].mxu0 }
 0x369   : > { %v1742_v54 = vpop.f32.mrb[59].mxu0 }
 0x36a   : > { %1462 = vst [vmem:[%s2611_s17 + $0x58] sm:$0xff] %v1446_v48  ;;  %v1743_v55 = vadd.f32 %v1742_v54, %v1741_v53  ;;  %v1324_v56 = vadd.f32 %v1740_v52, %v2606_v50 }
 0x36c   : > { %v1421_v29 = vadd.f32 %v2597_v24, %v1324_v56  ;;  %v1327_v57 = vadd.f32 %v1743_v55, %v2606_v50 }
 0x36e   : > { %v1447_v33 = vmax.f32 %v1421_v29, 0.0  ;;  %v1424_v58 = vadd.f32 %v2601_v39, %v1327_v57  ;;  %v1744_v59 = vpop.f32.mrb[60].mxu0 }
 0x36f   : > { %v1745_v60 = vpop.f32.mrb[61].mxu0 }
 0x370   : > { %1463 = vst [vmem:[%s2611_s17 + $0x60] sm:$0xff] %v1447_v33  ;;  %v1448_v61 = vmax.f32 %v1424_v58, 0.0  ;;  %v1746_v62 = vadd.f32 %v1745_v60, %v1744_v59  ;;  %v1747_v63 = vpop.f32.mrb[62].mxu0 }
 0x371   : > { %v1748_v0 = vpop.f32.mrb[63].mxu0 }
 0x372   : > { %1464 = vst [vmem:[%s2611_s17 + $0x68] sm:$0xff] %v1448_v61  ;;  %v1332_v24 = vadd.f32 %v1746_v62, %v2606_v50  ;;  %v1749_v1 = vadd.f32 %v1748_v0, %v1747_v63 }
 0x374   : > { %v1429_v2 = vadd.f32 %v2595_v14, %v1332_v24  ;;  %v1335_v3 = vadd.f32 %v1749_v1, %v2606_v50 }
 0x376   : > { %v1449_v39 = vmax.f32 %v1429_v2, 0.0  ;;  %v1432_v4 = vadd.f32 %v2599_v34, %v1335_v3 }
 0x378   : > { %1465 = vst [vmem:[%s2611_s17 + $0x70] sm:$0xff] %v1449_v39  ;;  %v1450_v5 = vmax.f32 %v1432_v4, 0.0 }
 0x37a   : > { %1466 = vst [vmem:[%s2611_s17 + $0x78] sm:$0xff] %v1450_v5 }
 0x37b   : > { %2113 = shalt.err (!%p2110_p4)
}
 0x37c   : > { %s2114_s22 = scalar_lea.hbm %s2656_s11, 2048  ;;  %s2118_s15 = scalar_lea.hbm %s2711_s7, 4096 }
 0x37d   : > { %p2115_p9 = scmp.ne.s32.totalorder %s2656_s11, %s2114_s22  ;;  %p2119_p8 = scmp.lt.u32.totalorder %s2656_s11, %s2711_s7 }
 0x37e   : > { %p2120_p13 = scmp.lt.u32.totalorder %s2118_s15, %s2114_s22  ;;  %p2122_p10 = scmp.lt.u32.totalorder %s2114_s22, %s2656_s11 }
 0x37f   : > { %p2116_p0 = pnand %p2115_p9, %p2376_p5 }
 0x380   : > { %p2121_p6 = por %p2120_p13, %p2119_p8 }
 0x381   : > { %p2117_p11 = pneg %p2116_p0 }
 0x382   : > { %p2123_p3 = por %p2122_p10, %p2121_p6 }
 0x384   : > { %p2124_p7 = pnand %p2123_p3, %p2117_p11 }
 0x386   : > { %2127 = shalt.err (!%p2124_p7)
}
 0x387   : > { %s2186_s29 = smov 128   ;;  %s2187_s23 = smov 8  }
 0x388   : > { %1812 = dma.vmem_to_hbm [thread:$0]  (%p2376_p5), %s2658_s16, 2048, %s2656_s11, %s1468_s20, %s2186_s29, %s2186_s29, %s2187_s23  }
 0x389 PF: > { %s2731_s30 = sld [smem:[#allocation15_spill]]  ;;  %s1496_s28 = sand.u32 1, %s2162_s24  }
 0x38a   : > { %p2733_p2 = scmp.ge.s32.totalorder %s2174_s27, 2  ;;  %s1497_s9 = scalar_lea.sflag [#allocation4], %s1496_s28 }
 0x38f   : > { %p2732_p12 = scmp.ne.s32.totalorder %s2731_s30, 0 }
 0x391   : > { %p1829_p1 = pnand %p2733_p2, %p2732_p12 }
 0x393   : > { %2157 = dma.done.wait (!%p1829_p1), %s1497_s9, 2048  }
 0x394   : > { %2159 = vsyncadd (!%p1829_p1), %s1497_s9, 4294965248  ;;  %p22_p4 = scmp.ge.s32.totalorder %s2362_s8, 4   ;;  %s2734_s24 = smov %s2166_s25 }
 0x395   : > { %s2735_s25 = smov %s2170_s26  ;;  %s2736_s26 = smov %s2372_s19 }
 0x396   : > { %s2737_s27 = smov %s2362_s8  ;;  %24 = sbr.rel (!%p22_p4) target bundleno = 7 (0x7), region = 105 }
 0x39d   :  { %1502 = vsyncpa [#allocation3], 1 }
 0x39e   :  { %1504 = vsyncpa [#allocation3 + $0x1], 1 }
 0x39f   :  { %1505 = vsyncpa [#allocation6], 1 }
 0x3a0   :  { %1506 = vsyncpa [#allocation9], 1 }
 0x3a1   :  { %1507 = vsyncpa [#allocation4], 1 }
 0x3a2   :  { %1509 = vsyncpa [#allocation4 + $0x1], 1 }

</bundles_post_ra>
